<compile_context>
chip_gen: v6e
topology: v6e:2x2x1
jax: 0.10.0
libtpu: 0.0.40
codegen_flags: <defaults>
</compile_context>

<pallas_src>
import jax
import jax.numpy as jnp
from jax import lax
from jax.experimental import pallas as pl
from jax.experimental.pallas import tpu as pltpu

_VMEM = pl.BlockSpec(memory_space=pltpu.MemorySpace.VMEM)
_SMEM = pl.BlockSpec(memory_space=pltpu.MemorySpace.SMEM)

_LANE = 128
_SUBLANE = 8


def _round_up(x, m):
    return ((x + m - 1) // m) * m


# ---------------------------------------------------------------- kernel ----

def _meta_fused_kernel(idx_ref,                               # SMEM (Rp,) i32
                       feat_ref, adj_ref, adjt_ref,           # VMEM inputs
                       wgate_ref, mlpw_ref, mlpb_ref, meta_ref,
                       h_ref, fc_ref, logits_ref,             # VMEM outputs
                       sel_ref):                              # VMEM scratch
    f32 = jnp.float32
    # x @ y^T without materializing a transpose (contract dim 1 with dim 1).
    contract_last = (((1,), (1,)), ((), ()))

    # --- graph propagation: h1 = adj @ feat ; h2 = adj_tilde @ h1 ------------
    h0 = feat_ref[...]                                        # (N, Hp)
    h1 = jnp.dot(adj_ref[...], h0, preferred_element_type=f32)
    h2 = jnp.dot(adjt_ref[...], h1, preferred_element_type=f32)

    # --- retain-score gating: one VPU multiply + ONE cross-lane reduce -------
    w = wgate_ref[...]                                        # (1, Hp)
    hs = jnp.concatenate([h0, h1, h2], axis=0)                # (3N, Hp)
    s = jax.nn.sigmoid(jnp.sum(hs * w, axis=-1, keepdims=True))   # (3N, 1)
    n = h0.shape[0]
    h_mix = s[:n] * h0 + s[n:2 * n] * h1 + s[2 * n:] * h2
    h_ref[...] = h_mix

    # --- prework: fc = L2-normalize(meta @ W^T + b), rsqrt on the EUP --------
    y = lax.dot_general(meta_ref[...], mlpw_ref[...],
                        dimension_numbers=contract_last,
                        preferred_element_type=f32) + mlpb_ref[...]
    sumsq = jnp.sum(y * y, axis=-1, keepdims=True)
    # y * rsqrt(max(sumsq, 1e-24)) == y / max(||y||, 1e-12)  (F.normalize)
    fc = y * lax.rsqrt(jnp.maximum(sumsq, 1e-24))
    fc_ref[...] = fc

    # --- preforward (merged spt+qry): gather rows of h via SMEM indices ------
    for r in range(sel_ref.shape[0]):                         # static unroll
        sel_ref[pl.ds(r, 1), :] = h_ref[pl.ds(idx_ref[r], 1), :]
    logits_ref[...] = lax.dot_general(sel_ref[...], fc,
                                      dimension_numbers=contract_last,
                                      preferred_element_type=f32)


# --------------------------------------------------------------- wrapper ----

def meta_setup_and_preforward(feat, adj, adj_tilde, weight,
                              mlp_w, mlp_b, meta_information,
                              x_spt, x_qry):
    """Reproduces Meta.__init__ graph mixing + prework + preforward (fused)."""
    N, H = feat.shape
    n_way = meta_information.shape[0]
    n_spt = x_spt.shape[0]
    n_qry = x_qry.shape[0]
    R = n_spt + n_qry

    Hp = _round_up(H, _LANE)          # lane-dense hidden axis
    Np = _round_up(N, _SUBLANE)
    Wp = _round_up(n_way, _LANE)      # lane-dense logits axis
    Rp = _round_up(R, _SUBLANE)

    def pad2(x, rows, cols):
        return jnp.pad(x.astype(jnp.float32),
                       ((0, rows - x.shape[0]), (0, cols - x.shape[1])))

    feat_p = pad2(feat, Np, Hp)
    adj_p = pad2(adj, Np, Np)
    adjt_p = pad2(adj_tilde, Np, Np)
    wgate_p = pad2(weight.reshape(1, H), 1, Hp)
    mlpw_p = pad2(mlp_w, Hp, Hp)
    mlpb_p = pad2(mlp_b.reshape(1, H), 1, Hp)
    meta_p = pad2(meta_information, Wp, Hp)

    idx = jnp.concatenate([x_spt, x_qry]).astype(jnp.int32)
    idx_p = jnp.pad(idx, (0, Rp - R))          # padded rows gather node 0

    h_p, fc_p, logits_p = pl.pallas_call(
        _meta_fused_kernel,
        out_shape=(jax.ShapeDtypeStruct((Np, Hp), jnp.float32),   # h
                   jax.ShapeDtypeStruct((Wp, Hp), jnp.float32),   # fc
                   jax.ShapeDtypeStruct((Rp, Wp), jnp.float32)),  # logits
        in_specs=[_SMEM] + [_VMEM] * 7,
        out_specs=(_VMEM, _VMEM, _VMEM),
        scratch_shapes=[pltpu.VMEM((Rp, Hp), jnp.float32)],
    )(idx_p, feat_p, adj_p, adjt_p, wgate_p, mlpw_p, mlpb_p, meta_p)

    h = h_p[:N, :H]
    fc = fc_p[:n_way, :H]
    logits = logits_p[:R, :n_way]
    return h, fc, logits[:n_spt], logits[n_spt:]


meta_setup_and_preforward = jax.jit(meta_setup_and_preforward)


# ------------------------------------------------------------------ main ----

if __name__ == "__main__":
    key = jax.random.PRNGKey(0)
    N, hidden = 32, 32          # nodes, feature dim
    n_way, k_spt, k_qry = 4, 1, 2

    ks = jax.random.split(key, 8)
    feat = jax.random.normal(ks[0], (N, hidden), dtype=jnp.float32)

    # row-normalized dense "adjacency" matrices
    a_raw = jax.random.uniform(ks[1], (N, N), dtype=jnp.float32)
    adj = a_raw / jnp.sum(a_raw, axis=-1, keepdims=True)
    at_raw = jax.random.uniform(ks[2], (N, N), dtype=jnp.float32)
    adj_tilde = at_raw / jnp.sum(at_raw, axis=-1, keepdims=True)

    # Meta.__init__ gating weight: uniform(-1/sqrt(hidden), 1/sqrt(hidden))
    stdv = 1.0 / jnp.sqrt(jnp.float32(hidden))
    weight = jax.random.uniform(ks[3], (hidden, 1), dtype=jnp.float32,
                                minval=-stdv, maxval=stdv)

    # MLP (nn.Linear(hidden, hidden)) parameters
    mlp_w = jax.random.uniform(ks[4], (hidden, hidden), dtype=jnp.float32,
                               minval=-stdv, maxval=stdv)
    mlp_b = jax.random.uniform(ks[5], (hidden,), dtype=jnp.float32,
                               minval=-stdv, maxval=stdv)

    # per-task meta information (one task), support/query node indices
    meta_information = jax.random.normal(ks[6], (n_way, hidden),
                                         dtype=jnp.float32)
    perm = jax.random.permutation(ks[7], N)
    x_spt = perm[: n_way * k_spt]
    x_qry = perm[n_way * k_spt: n_way * (k_spt + k_qry)]

    h, fc, logits_two, logits_three = meta_setup_and_preforward(
        feat, adj, adj_tilde, weight, mlp_w, mlp_b,
        meta_information, x_spt, x_qry)
    jax.block_until_ready((h, fc, logits_two, logits_three))

    # --- pure-JAX reference check of kernel semantics ---
    h1_r = adj @ feat
    h2_r = adj_tilde @ h1_r
    pps = jnp.stack([feat, h1_r, h2_r], axis=1)                # (N, 3, H)
    retain = jax.nn.sigmoid(jnp.squeeze(pps @ weight, -1))     # (N, 3)
    h_r = jnp.squeeze(retain[:, None, :] @ pps, 1)             # (N, H)
    y = meta_information @ mlp_w.T + mlp_b
    fc_r = y / jnp.maximum(
        jnp.sqrt(jnp.sum(y * y, -1, keepdims=True)), 1e-12)
    l2_r = h_r[x_spt] @ fc_r.T
    l3_r = h_r[x_qry] @ fc_r.T
    assert jnp.allclose(h, h_r, atol=5e-4), "h mismatch"
    assert jnp.allclose(fc, fc_r, atol=5e-4), "fc mismatch"
    assert jnp.allclose(logits_two, l2_r, atol=5e-4), "logits_two mismatch"
    assert jnp.allclose(logits_three, l3_r, atol=5e-4), "logits_three mismatch"

    print("KERNEL_OK")
</pallas_src>

<mosaic_0001>
module attributes {stable_mosaic.version = 11 : i64} {
  func.func @_meta_fused_kernel(%arg0: memref<16xi32, #tpu.memory_space<smem>>, %arg1: memref<32x128xf32, #tpu.memory_space<vmem>>, %arg2: memref<32x32xf32, #tpu.memory_space<vmem>>, %arg3: memref<32x32xf32, #tpu.memory_space<vmem>>, %arg4: memref<1x128xf32, #tpu.memory_space<vmem>>, %arg5: memref<128x128xf32, #tpu.memory_space<vmem>>, %arg6: memref<1x128xf32, #tpu.memory_space<vmem>>, %arg7: memref<128x128xf32, #tpu.memory_space<vmem>>, %arg8: memref<32x128xf32, #tpu.memory_space<vmem>>, %arg9: memref<128x128xf32, #tpu.memory_space<vmem>>, %arg10: memref<16x128xf32, #tpu.memory_space<vmem>>, %arg11: memref<16x128xf32, #tpu.memory_space<vmem>>) attributes {dimension_semantics = [], scalar_prefetch = 0 : i64, scratch_operands = 1 : i64, tpu.core_type = #tpu.core_type<tc>} {
    %c0 = arith.constant 0 : index
    %c0_0 = arith.constant 0 : index
    %0 = vector.load %arg1[%c0, %c0_0] : memref<32x128xf32, #tpu.memory_space<vmem>>, vector<32x128xf32>
    %c0_1 = arith.constant 0 : index
    %c0_2 = arith.constant 0 : index
    %1 = vector.load %arg2[%c0_1, %c0_2] : memref<32x32xf32, #tpu.memory_space<vmem>>, vector<32x32xf32>
    %cst = arith.constant dense<0.000000e+00> : vector<32x128xf32>
    %2 = tpu.matmul %1, %0, %cst {dimension_numbers = #tpu.dot_dimension_numbers<[1], [0], [0], [1], [0, 0, 1, 1], [], []>} : vector<32x32xf32>, vector<32x128xf32>, vector<32x128xf32> -> vector<32x128xf32>
    %c0_3 = arith.constant 0 : index
    %c0_4 = arith.constant 0 : index
    %3 = vector.load %arg3[%c0_3, %c0_4] : memref<32x32xf32, #tpu.memory_space<vmem>>, vector<32x32xf32>
    %cst_5 = arith.constant dense<0.000000e+00> : vector<32x128xf32>
    %4 = tpu.matmul %3, %2, %cst_5 {dimension_numbers = #tpu.dot_dimension_numbers<[1], [0], [0], [1], [0, 0, 1, 1], [], []>} : vector<32x32xf32>, vector<32x128xf32>, vector<32x128xf32> -> vector<32x128xf32>
    %c0_6 = arith.constant 0 : index
    %c0_7 = arith.constant 0 : index
    %5 = vector.load %arg4[%c0_6, %c0_7] : memref<1x128xf32, #tpu.memory_space<vmem>>, vector<1x128xf32>
    %6 = tpu.concatenate %0, %2, %4 in 0 : vector<32x128xf32>, vector<32x128xf32>, vector<32x128xf32> -> vector<96x128xf32>
    %7 = vector.broadcast %5 : vector<1x128xf32> to vector<96x128xf32>
    %8 = arith.mulf %6, %7 : vector<96x128xf32>
    %cst_8 = arith.constant dense<0.000000e+00> : vector<96xf32>
    %9 = vector.multi_reduction <add>, %8, %cst_8 [1] : vector<96x128xf32> to vector<96xf32>
    %10 = vector.shape_cast %9 : vector<96xf32> to vector<96x1xf32>
    %11 = arith.negf %10 : vector<96x1xf32>
    %12 = math.exp %11 : vector<96x1xf32>
    %cst_9 = arith.constant 1.000000e+00 : f32
    %13 = vector.broadcast %cst_9 : f32 to vector<96x1xf32>
    %14 = arith.addf %13, %12 : vector<96x1xf32>
    %15 = arith.divf %13, %14 : vector<96x1xf32>
    %16 = vector.extract_strided_slice %15 {offsets = [0, 0], sizes = [32, 1], strides = [1, 1]} : vector<96x1xf32> to vector<32x1xf32>
    %17 = vector.broadcast %16 : vector<32x1xf32> to vector<32x128xf32>
    %18 = arith.mulf %17, %0 : vector<32x128xf32>
    %19 = vector.extract_strided_slice %15 {offsets = [32, 0], sizes = [32, 1], strides = [1, 1]} : vector<96x1xf32> to vector<32x1xf32>
    %20 = vector.broadcast %19 : vector<32x1xf32> to vector<32x128xf32>
    %21 = arith.mulf %20, %2 : vector<32x128xf32>
    %22 = arith.addf %18, %21 : vector<32x128xf32>
    %23 = vector.extract_strided_slice %15 {offsets = [64, 0], sizes = [32, 1], strides = [1, 1]} : vector<96x1xf32> to vector<32x1xf32>
    %24 = vector.broadcast %23 : vector<32x1xf32> to vector<32x128xf32>
    %25 = arith.mulf %24, %4 : vector<32x128xf32>
    %26 = arith.addf %22, %25 : vector<32x128xf32>
    %c0_10 = arith.constant 0 : index
    %c0_11 = arith.constant 0 : index
    %27 = vector.load %arg8[%c0_10, %c0_11] : memref<32x128xf32, #tpu.memory_space<vmem>>, vector<32x128xf32>
    tpu.vector_store %arg8[%c0_10, %c0_11], %26 {strides = array<i32>} : memref<32x128xf32, #tpu.memory_space<vmem>>, vector<32x128xf32>,
    %c0_12 = arith.constant 0 : index
    %c0_13 = arith.constant 0 : index
    %28 = vector.load %arg7[%c0_12, %c0_13] : memref<128x128xf32, #tpu.memory_space<vmem>>, vector<128x128xf32>
    %c0_14 = arith.constant 0 : index
    %c0_15 = arith.constant 0 : index
    %29 = vector.load %arg5[%c0_14, %c0_15] : memref<128x128xf32, #tpu.memory_space<vmem>>, vector<128x128xf32>
    %cst_16 = arith.constant dense<0.000000e+00> : vector<128x128xf32>
    %30 = tpu.matmul %28, %29, %cst_16 {dimension_numbers = #tpu.dot_dimension_numbers<[1], [1], [0], [0], [0, 0, 1, 0], [], []>} : vector<128x128xf32>, vector<128x128xf32>, vector<128x128xf32> -> vector<128x128xf32>
    %c0_17 = arith.constant 0 : index
    %c0_18 = arith.constant 0 : index
    %31 = vector.load %arg6[%c0_17, %c0_18] : memref<1x128xf32, #tpu.memory_space<vmem>>, vector<1x128xf32>
    %32 = vector.broadcast %31 : vector<1x128xf32> to vector<128x128xf32>
    %33 = arith.addf %30, %32 : vector<128x128xf32>
    %34 = arith.mulf %33, %33 : vector<128x128xf32>
    %cst_19 = arith.constant dense<0.000000e+00> : vector<128xf32>
    %35 = vector.multi_reduction <add>, %34, %cst_19 [1] : vector<128x128xf32> to vector<128xf32>
    %36 = vector.shape_cast %35 : vector<128xf32> to vector<128x1xf32>
    %cst_20 = arith.constant 1.000000e-24 : f32
    %37 = vector.broadcast %cst_20 : f32 to vector<128x1xf32>
    %38 = arith.maximumf %36, %37 : vector<128x1xf32>
    %39 = math.rsqrt %38 : vector<128x1xf32>
    %40 = vector.broadcast %39 : vector<128x1xf32> to vector<128x128xf32>
    %41 = arith.mulf %33, %40 : vector<128x128xf32>
    %c0_21 = arith.constant 0 : index
    %c0_22 = arith.constant 0 : index
    %42 = vector.load %arg9[%c0_21, %c0_22] : memref<128x128xf32, #tpu.memory_space<vmem>>, vector<128x128xf32>
    tpu.vector_store %arg9[%c0_21, %c0_22], %41 {strides = array<i32>} : memref<128x128xf32, #tpu.memory_space<vmem>>, vector<128x128xf32>,
    %c0_23 = arith.constant 0 : index
    %43 = memref.load %arg0[%c0_23] : memref<16xi32, #tpu.memory_space<smem>>
    %44 = arith.index_cast %43 : i32 to index
    %c0_24 = arith.constant 0 : index
    %45 = vector.load %arg8[%44, %c0_24] : memref<32x128xf32, #tpu.memory_space<vmem>>, vector<1x128xf32>
    %c0_25 = arith.constant 0 : index
    %c0_26 = arith.constant 0 : index
    %46 = vector.load %arg11[%c0_25, %c0_26] : memref<16x128xf32, #tpu.memory_space<vmem>>, vector<1x128xf32>
    tpu.vector_store %arg11[%c0_25, %c0_26], %45 {strides = array<i32>} : memref<16x128xf32, #tpu.memory_space<vmem>>, vector<1x128xf32>,
    %c1 = arith.constant 1 : index
    %47 = memref.load %arg0[%c1] : memref<16xi32, #tpu.memory_space<smem>>
    %48 = arith.index_cast %47 : i32 to index
    %c0_27 = arith.constant 0 : index
    %49 = vector.load %arg8[%48, %c0_27] : memref<32x128xf32, #tpu.memory_space<vmem>>, vector<1x128xf32>
    %c1_28 = arith.constant 1 : index
    %c0_29 = arith.constant 0 : index
    %50 = vector.load %arg11[%c1_28, %c0_29] : memref<16x128xf32, #tpu.memory_space<vmem>>, vector<1x128xf32>
    tpu.vector_store %arg11[%c1_28, %c0_29], %49 {strides = array<i32>} : memref<16x128xf32, #tpu.memory_space<vmem>>, vector<1x128xf32>,
    %c2 = arith.constant 2 : index
    %51 = memref.load %arg0[%c2] : memref<16xi32, #tpu.memory_space<smem>>
    %52 = arith.index_cast %51 : i32 to index
    %c0_30 = arith.constant 0 : index
    %53 = vector.load %arg8[%52, %c0_30] : memref<32x128xf32, #tpu.memory_space<vmem>>, vector<1x128xf32>
    %c2_31 = arith.constant 2 : index
    %c0_32 = arith.constant 0 : index
    %54 = vector.load %arg11[%c2_31, %c0_32] : memref<16x128xf32, #tpu.memory_space<vmem>>, vector<1x128xf32>
    tpu.vector_store %arg11[%c2_31, %c0_32], %53 {strides = array<i32>} : memref<16x128xf32, #tpu.memory_space<vmem>>, vector<1x128xf32>,
    %c3 = arith.constant 3 : index
    %55 = memref.load %arg0[%c3] : memref<16xi32, #tpu.memory_space<smem>>
    %56 = arith.index_cast %55 : i32 to index
    %c0_33 = arith.constant 0 : index
    %57 = vector.load %arg8[%56, %c0_33] : memref<32x128xf32, #tpu.memory_space<vmem>>, vector<1x128xf32>
    %c3_34 = arith.constant 3 : index
    %c0_35 = arith.constant 0 : index
    %58 = vector.load %arg11[%c3_34, %c0_35] : memref<16x128xf32, #tpu.memory_space<vmem>>, vector<1x128xf32>
    tpu.vector_store %arg11[%c3_34, %c0_35], %57 {strides = array<i32>} : memref<16x128xf32, #tpu.memory_space<vmem>>, vector<1x128xf32>,
    %c4 = arith.constant 4 : index
    %59 = memref.load %arg0[%c4] : memref<16xi32, #tpu.memory_space<smem>>
    %60 = arith.index_cast %59 : i32 to index
    %c0_36 = arith.constant 0 : index
    %61 = vector.load %arg8[%60, %c0_36] : memref<32x128xf32, #tpu.memory_space<vmem>>, vector<1x128xf32>
    %c4_37 = arith.constant 4 : index
    %c0_38 = arith.constant 0 : index
    %62 = vector.load %arg11[%c4_37, %c0_38] : memref<16x128xf32, #tpu.memory_space<vmem>>, vector<1x128xf32>
    tpu.vector_store %arg11[%c4_37, %c0_38], %61 {strides = array<i32>} : memref<16x128xf32, #tpu.memory_space<vmem>>, vector<1x128xf32>,
    %c5 = arith.constant 5 : index
    %63 = memref.load %arg0[%c5] : memref<16xi32, #tpu.memory_space<smem>>
    %64 = arith.index_cast %63 : i32 to index
    %c0_39 = arith.constant 0 : index
    %65 = vector.load %arg8[%64, %c0_39] : memref<32x128xf32, #tpu.memory_space<vmem>>, vector<1x128xf32>
    %c5_40 = arith.constant 5 : index
    %c0_41 = arith.constant 0 : index
    %66 = vector.load %arg11[%c5_40, %c0_41] : memref<16x128xf32, #tpu.memory_space<vmem>>, vector<1x128xf32>
    tpu.vector_store %arg11[%c5_40, %c0_41], %65 {strides = array<i32>} : memref<16x128xf32, #tpu.memory_space<vmem>>, vector<1x128xf32>,
    %c6 = arith.constant 6 : index
    %67 = memref.load %arg0[%c6] : memref<16xi32, #tpu.memory_space<smem>>
    %68 = arith.index_cast %67 : i32 to index
    %c0_42 = arith.constant 0 : index
    %69 = vector.load %arg8[%68, %c0_42] : memref<32x128xf32, #tpu.memory_space<vmem>>, vector<1x128xf32>
    %c6_43 = arith.constant 6 : index
    %c0_44 = arith.constant 0 : index
    %70 = vector.load %arg11[%c6_43, %c0_44] : memref<16x128xf32, #tpu.memory_space<vmem>>, vector<1x128xf32>
    tpu.vector_store %arg11[%c6_43, %c0_44], %69 {strides = array<i32>} : memref<16x128xf32, #tpu.memory_space<vmem>>, vector<1x128xf32>,
    %c7 = arith.constant 7 : index
    %71 = memref.load %arg0[%c7] : memref<16xi32, #tpu.memory_space<smem>>
    %72 = arith.index_cast %71 : i32 to index
    %c0_45 = arith.constant 0 : index
    %73 = vector.load %arg8[%72, %c0_45] : memref<32x128xf32, #tpu.memory_space<vmem>>, vector<1x128xf32>
    %c7_46 = arith.constant 7 : index
    %c0_47 = arith.constant 0 : index
    %74 = vector.load %arg11[%c7_46, %c0_47] : memref<16x128xf32, #tpu.memory_space<vmem>>, vector<1x128xf32>
    tpu.vector_store %arg11[%c7_46, %c0_47], %73 {strides = array<i32>} : memref<16x128xf32, #tpu.memory_space<vmem>>, vector<1x128xf32>,
    %c8 = arith.constant 8 : index
    %75 = memref.load %arg0[%c8] : memref<16xi32, #tpu.memory_space<smem>>
    %76 = arith.index_cast %75 : i32 to index
    %c0_48 = arith.constant 0 : index
    %77 = vector.load %arg8[%76, %c0_48] : memref<32x128xf32, #tpu.memory_space<vmem>>, vector<1x128xf32>
    %c8_49 = arith.constant 8 : index
    %c0_50 = arith.constant 0 : index
    %78 = vector.load %arg11[%c8_49, %c0_50] : memref<16x128xf32, #tpu.memory_space<vmem>>, vector<1x128xf32>
    tpu.vector_store %arg11[%c8_49, %c0_50], %77 {strides = array<i32>} : memref<16x128xf32, #tpu.memory_space<vmem>>, vector<1x128xf32>,
    %c9 = arith.constant 9 : index
    %79 = memref.load %arg0[%c9] : memref<16xi32, #tpu.memory_space<smem>>
    %80 = arith.index_cast %79 : i32 to index
    %c0_51 = arith.constant 0 : index
    %81 = vector.load %arg8[%80, %c0_51] : memref<32x128xf32, #tpu.memory_space<vmem>>, vector<1x128xf32>
    %c9_52 = arith.constant 9 : index
    %c0_53 = arith.constant 0 : index
    %82 = vector.load %arg11[%c9_52, %c0_53] : memref<16x128xf32, #tpu.memory_space<vmem>>, vector<1x128xf32>
    tpu.vector_store %arg11[%c9_52, %c0_53], %81 {strides = array<i32>} : memref<16x128xf32, #tpu.memory_space<vmem>>, vector<1x128xf32>,
    %c10 = arith.constant 10 : index
    %83 = memref.load %arg0[%c10] : memref<16xi32, #tpu.memory_space<smem>>
    %84 = arith.index_cast %83 : i32 to index
    %c0_54 = arith.constant 0 : index
    %85 = vector.load %arg8[%84, %c0_54] : memref<32x128xf32, #tpu.memory_space<vmem>>, vector<1x128xf32>
    %c10_55 = arith.constant 10 : index
    %c0_56 = arith.constant 0 : index
    %86 = vector.load %arg11[%c10_55, %c0_56] : memref<16x128xf32, #tpu.memory_space<vmem>>, vector<1x128xf32>
    tpu.vector_store %arg11[%c10_55, %c0_56], %85 {strides = array<i32>} : memref<16x128xf32, #tpu.memory_space<vmem>>, vector<1x128xf32>,
    %c11 = arith.constant 11 : index
    %87 = memref.load %arg0[%c11] : memref<16xi32, #tpu.memory_space<smem>>
    %88 = arith.index_cast %87 : i32 to index
    %c0_57 = arith.constant 0 : index
    %89 = vector.load %arg8[%88, %c0_57] : memref<32x128xf32, #tpu.memory_space<vmem>>, vector<1x128xf32>
    %c11_58 = arith.constant 11 : index
    %c0_59 = arith.constant 0 : index
    %90 = vector.load %arg11[%c11_58, %c0_59] : memref<16x128xf32, #tpu.memory_space<vmem>>, vector<1x128xf32>
    tpu.vector_store %arg11[%c11_58, %c0_59], %89 {strides = array<i32>} : memref<16x128xf32, #tpu.memory_space<vmem>>, vector<1x128xf32>,
    %c12 = arith.constant 12 : index
    %91 = memref.load %arg0[%c12] : memref<16xi32, #tpu.memory_space<smem>>
    %92 = arith.index_cast %91 : i32 to index
    %c0_60 = arith.constant 0 : index
    %93 = vector.load %arg8[%92, %c0_60] : memref<32x128xf32, #tpu.memory_space<vmem>>, vector<1x128xf32>
    %c12_61 = arith.constant 12 : index
    %c0_62 = arith.constant 0 : index
    %94 = vector.load %arg11[%c12_61, %c0_62] : memref<16x128xf32, #tpu.memory_space<vmem>>, vector<1x128xf32>
    tpu.vector_store %arg11[%c12_61, %c0_62], %93 {strides = array<i32>} : memref<16x128xf32, #tpu.memory_space<vmem>>, vector<1x128xf32>,
    %c13 = arith.constant 13 : index
    %95 = memref.load %arg0[%c13] : memref<16xi32, #tpu.memory_space<smem>>
    %96 = arith.index_cast %95 : i32 to index
    %c0_63 = arith.constant 0 : index
    %97 = vector.load %arg8[%96, %c0_63] : memref<32x128xf32, #tpu.memory_space<vmem>>, vector<1x128xf32>
    %c13_64 = arith.constant 13 : index
    %c0_65 = arith.constant 0 : index
    %98 = vector.load %arg11[%c13_64, %c0_65] : memref<16x128xf32, #tpu.memory_space<vmem>>, vector<1x128xf32>
    tpu.vector_store %arg11[%c13_64, %c0_65], %97 {strides = array<i32>} : memref<16x128xf32, #tpu.memory_space<vmem>>, vector<1x128xf32>,
    %c14 = arith.constant 14 : index
    %99 = memref.load %arg0[%c14] : memref<16xi32, #tpu.memory_space<smem>>
    %100 = arith.index_cast %99 : i32 to index
    %c0_66 = arith.constant 0 : index
    %101 = vector.load %arg8[%100, %c0_66] : memref<32x128xf32, #tpu.memory_space<vmem>>, vector<1x128xf32>
    %c14_67 = arith.constant 14 : index
    %c0_68 = arith.constant 0 : index
    %102 = vector.load %arg11[%c14_67, %c0_68] : memref<16x128xf32, #tpu.memory_space<vmem>>, vector<1x128xf32>
    tpu.vector_store %arg11[%c14_67, %c0_68], %101 {strides = array<i32>} : memref<16x128xf32, #tpu.memory_space<vmem>>, vector<1x128xf32>,
    %c15 = arith.constant 15 : index
    %103 = memref.load %arg0[%c15] : memref<16xi32, #tpu.memory_space<smem>>
    %104 = arith.index_cast %103 : i32 to index
    %c0_69 = arith.constant 0 : index
    %105 = vector.load %arg8[%104, %c0_69] : memref<32x128xf32, #tpu.memory_space<vmem>>, vector<1x128xf32>
    %c15_70 = arith.constant 15 : index
    %c0_71 = arith.constant 0 : index
    %106 = vector.load %arg11[%c15_70, %c0_71] : memref<16x128xf32, #tpu.memory_space<vmem>>, vector<1x128xf32>
    tpu.vector_store %arg11[%c15_70, %c0_71], %105 {strides = array<i32>} : memref<16x128xf32, #tpu.memory_space<vmem>>, vector<1x128xf32>,
    %c0_72 = arith.constant 0 : index
    %c0_73 = arith.constant 0 : index
    %107 = vector.load %arg11[%c0_72, %c0_73] : memref<16x128xf32, #tpu.memory_space<vmem>>, vector<16x128xf32>
    %cst_74 = arith.constant dense<0.000000e+00> : vector<16x128xf32>
    %108 = tpu.matmul %107, %41, %cst_74 {dimension_numbers = #tpu.dot_dimension_numbers<[1], [1], [0], [0], [0, 0, 1, 0], [], []>} : vector<16x128xf32>, vector<128x128xf32>, vector<16x128xf32> -> vector<16x128xf32>
    %c0_75 = arith.constant 0 : index
    %c0_76 = arith.constant 0 : index
    %109 = vector.load %arg10[%c0_75, %c0_76] : memref<16x128xf32, #tpu.memory_space<vmem>>, vector<16x128xf32>
    tpu.vector_store %arg10[%c0_75, %c0_76], %108 {strides = array<i32>} : memref<16x128xf32, #tpu.memory_space<vmem>>, vector<16x128xf32>,
    return
  }
}

</mosaic_0001>

<bundles_post_ra>
// kernel: meta_setup_and_preforward.1
= control target key start
LH: loop header
LB: loop body
LE: loop exit
PB: predicated region body
PF: predicated region fallthrough
CT: control target
= control target key end

     0   :  { %16 = vsyncpa [#allocation5], 0  ;;  %s1696_s0 = inlined_call_operand.vmem [shape: s32[16], index: 0, kind: input, shape index: {}]   ;;  %s1697_s1 = inlined_call_operand.vmem [shape: f32[32,128], index: 1, kind: input, shape index: {}]   ;;  %s1698_s2 = inlined_call_operand.vmem [shape: f32[32,32], index: 2, kind: input, shape index: {}]   ;;  %s1699_s3 = inlined_call_operand.vmem [shape: f32[32,32], index: 3, kind: input, shape index: {}]   ;;  %s1700_s4 = inlined_call_operand.vmem [shape: f32[1,128], index: 4, kind: input, shape index: {}]   ;;  %s1701_s5 = inlined_call_operand.vmem [shape: f32[128,128], index: 5, kind: input, shape index: {}]   ;;  %s1702_s6 = inlined_call_operand.vmem [shape: f32[1,128], index: 6, kind: input, shape index: {}]   ;;  %s1703_s7 = inlined_call_operand.vmem [shape: f32[128,128], index: 7, kind: input, shape index: {}]   ;;  %s1704_s8 = inlined_call_operand.hbm [shape: f32[32,128], index: 8, kind: output, shape index: {0}]   ;;  %s1705_s9 = inlined_call_operand.vmem [shape: f32[128,128], index: 9, kind: output, shape index: {1}]   ;;  %s1706_s10 = inlined_call_operand.vmem [shape: f32[16,128], index: 10, kind: output, shape index: {2}]  }
   0x1   :  { %17 = vsyncpa [#allocation4], 0  ;;  %s24_s15 = sshll.u32 %s1696_s0, 4  ;;  %s25_s15 = int_to_ptr.vmem [resolvable:$true] %s24_s15 }
   0x2   :  { %s1178_s16 = scalar_lea.vmem %s25_s15, 16  ;;  %p1183_p1 = scmp.lt.s32.totalorder %s25_s15, %s25_s15 }
   0x3   :  { %p1179_p0 = scmp.ne.s32.totalorder %s25_s15, %s1178_s16  ;;  %p1184_p2 = scmp.lt.s32.totalorder %s1178_s16, %s1178_s16 }
   0x5   :  { %p1185_p3 = por %p1184_p2, %p1183_p1 }
   0x7   :  { %p1186_p4 = pnand %p1185_p3, %p1179_p0 }
   0x9   :  { %1189 = shalt.err (!%p1186_p4)
}
   0xa   :  { %s1214_s17 = smov [#allocation3]  }
   0xb   :  { %27 = dma.vmem_to_smem %s25_s15, 16, %s1214_s17, [#allocation5]  }
   0xc   :  { %1210 = dma.done.wait [#allocation5], 16  }
   0xd   :  { %1211 = vsyncadd [#allocation5], 4294967280 }
   0xe   :  { %45 = sfence }
   0xf   :  { %v1279_v0 = vld [vmem:[%s1697_s1 + $0x18] sm:$0xff]  ;;  %v1287_v2 = vld [vmem:[%s1697_s1 + $0x10] sm:$0xff]  ;;  %vm54_vm0 = vcmask 261120   ;;  %v1297_v4 = vld [vmem:[%s1697_s1 + $0x8] sm:$0xff]  ;;  %s1592_s27 = sld [smem:[#allocation3]]  ;;  %s1215_s20 = smov [#allocation6]  }
  0x10   :  { %v423_v1 = vld [vmem:[%s1701_s5 + $0x78] sm:$0xff]  ;;  %975 = vmatprep.subr.mxu1 %v1279_v0  ;;  %v422_v3 = vld [vmem:[%s1701_s5 + $0x70] sm:$0xff]  ;;  %v50_v5 = vld [vmem:[%s1698_s2] sm:$0xff]  ;;  %s1598_s29 = sld [smem:[#allocation3 + $0x1]] }
  0x11   :  { %1003 = vmatprep.subr.mxu0 %v423_v1  ;;  %976 = vmatpush3.msra.mxu1 %v1279_v0  ;;  %v1307_v6 = vld [vmem:[%s1697_s1] sm:$0xff]  ;;  %v421_v7 = vld [vmem:[%s1701_s5 + $0x68] sm:$0xff]  ;;  %v52_v9 = vld [vmem:[%s1698_s2 + $0x10] sm:$0xff]  ;;  %s1608_s11 = sld [smem:[#allocation3 + $0x3]] }
  0x12   :  { %1004 = vmatpush3.xpose.msra.mxu0 %v423_v1  ;;  %977 = vmatprep.subr.mxu1 %v1287_v2  ;;  %v51_v8 = vld [vmem:[%s1698_s2 + $0x8] sm:$0xff]  ;;  %v420_v10 = vld [vmem:[%s1701_s5 + $0x60] sm:$0xff]  ;;  %v53_v12 = vld [vmem:[%s1698_s2 + $0x18] sm:$0xff]  ;;  %s1610_s12 = sld [smem:[#allocation3 + $0x4]] }
  0x13   :  { %1005 = vmatprep.subr.mxu0 %v422_v3  ;;  %978 = vmatpush3.msra.mxu1 %v1287_v2  ;;  %v392_v11 = vld [vmem:[%s1703_s7] sm:$0xff]  ;;  %v419_v13 = vld [vmem:[%s1701_s5 + $0x58] sm:$0xff]  ;;  %v418_v14 = vld [vmem:[%s1701_s5 + $0x50] sm:$0xff]  ;;  %s1618_s1 = sld [smem:[#allocation3 + $0x5]] }
  0x14   :  { %983 = vmatprep.mubr.msk.f32.mxu1 %vm54_vm0, %v50_v5  ;;  %979 = vmatprep.subr.mxu1 %v1297_v4  ;;  %v417_v15 = vld [vmem:[%s1701_s5 + $0x48] sm:$0xff]  ;;  %v416_v16 = vld [vmem:[%s1701_s5 + $0x40] sm:$0xff]  ;;  %v415_v17 = vld [vmem:[%s1701_s5 + $0x38] sm:$0xff]  ;;  %s1628_s16 = sld [smem:[#allocation3 + $0x7]] }
  0x15   :  { %980 = vmatpush3.msra.mxu1 %v1297_v4  ;;  %1035 = vmatprep.mubr.f32.mxu0 %v392_v11  ;;  %v414_v18 = vld [vmem:[%s1701_s5 + $0x30] sm:$0xff]  ;;  %v413_v19 = vld [vmem:[%s1701_s5 + $0x28] sm:$0xff]  ;;  %v412_v20 = vld [vmem:[%s1701_s5 + $0x20] sm:$0xff]  ;;  %s1631_s17 = sld [smem:[#allocation3 + $0x8]]  ;;  %s689_s13 = scalar_lea.vmem [#allocation6], %s1592_s27 }
  0x16   :  { %1006 = vmatpush3.xpose.msra.mxu0 %v422_v3  ;;  %981 = vmatprep.subr.mxu1 %v1307_v6  ;;  %v411_v21 = vld [vmem:[%s1701_s5 + $0x18] sm:$0xff]  ;;  %v410_v22 = vld [vmem:[%s1701_s5 + $0x10] sm:$0xff]  ;;  %v409_v23 = vld [vmem:[%s1701_s5 + $0x8] sm:$0xff]  ;;  %s1634_s18 = sld [smem:[#allocation3 + $0x9]]  ;;  %s693_s14 = scalar_lea.vmem [#allocation6], %s1598_s29 }
  0x17   :  { %1007 = vmatprep.subr.mxu0 %v421_v7  ;;  %982 = vmatpush3.msra.mxu1 %v1307_v6  ;;  %v408_v24 = vld [vmem:[%s1701_s5] sm:$0xff]  ;;  %v393_v25 = vld [vmem:[%s1703_s7 + $0x8] sm:$0xff]  ;;  %v394_v26 = vld [vmem:[%s1703_s7 + $0x10] sm:$0xff]  ;;  %s1640_s0 = sld [smem:[#allocation3 + $0xa]] }
  0x18   :  { %984 = vmatmul.mubr.msk.f32.vlgmr.msra.gmra.mxu1 %vm54_vm0, %v51_v8  ;;  %v395_v27 = vld [vmem:[%s1703_s7 + $0x18] sm:$0xff]  ;;  %v396_v28 = vld [vmem:[%s1703_s7 + $0x20] sm:$0xff]  ;;  %v397_v29 = vld [vmem:[%s1703_s7 + $0x28] sm:$0xff]  ;;  %s1643_s21 = sld [smem:[#allocation3 + $0xb]]  ;;  %s705_s15 = scalar_lea.vmem [#allocation6], %s1610_s12 }
  0x19   :  { %986 = vmatprep.mubr.msk.f32.mxu1 %vm54_vm0, %v52_v9  ;;  %v398_v30 = vld [vmem:[%s1703_s7 + $0x30] sm:$0xff]  ;;  %v399_v31 = vld [vmem:[%s1703_s7 + $0x38] sm:$0xff]  ;;  %v400_v32 = vld [vmem:[%s1703_s7 + $0x40] sm:$0xff]  ;;  %s1651_s24 = sld [smem:[#allocation3 + $0xc]]  ;;  %s709_s19 = scalar_lea.vmem [#allocation6], %s1618_s1 }
  0x1a   :  { %1008 = vmatpush3.xpose.msra.mxu0 %v421_v7  ;;  %v401_v33 = vld [vmem:[%s1703_s7 + $0x48] sm:$0xff]  ;;  %v402_v34 = vld [vmem:[%s1703_s7 + $0x50] sm:$0xff]  ;;  %v403_v35 = vld [vmem:[%s1703_s7 + $0x58] sm:$0xff]  ;;  %s1654_s25 = sld [smem:[#allocation3 + $0xd]]  ;;  %s717_s29 = scalar_lea.vmem [#allocation6], %s1628_s16 }
  0x1b   :  { %1009 = vmatprep.subr.mxu0 %v420_v10  ;;  %v404_v36 = vld [vmem:[%s1703_s7 + $0x60] sm:$0xff]  ;;  %v405_v38 = vld [vmem:[%s1703_s7 + $0x68] sm:$0xff]  ;;  %v406_v39 = vld [vmem:[%s1703_s7 + $0x70] sm:$0xff]  ;;  %s1661_s28 = sld [smem:[#allocation3 + $0xe]] }
  0x1c   :  { %987 = vmatmul.mubr.msk.f32.gmra.mxu1 %vm54_vm0, %v53_v12  ;;  %v152_v37 = vld [vmem:[%s1699_s3] sm:$0xff]  ;;  %v407_v40 = vld [vmem:[%s1703_s7 + $0x78] sm:$0xff]  ;;  %v153_v47 = vld [vmem:[%s1699_s3 + $0x8] sm:$0xff]  ;;  %s1664_s5 = sld [smem:[#allocation3 + $0xf]] }
  0x1d   :  { %997 = vmatprep.mubr.msk.f32.mxu1 %vm54_vm0, %v152_v37  ;;  %v1423_v41 = vld [vmem:[%s1700_s4] ss:$0 sm:$0xff]  ;;  %v154_v48 = vld [vmem:[%s1699_s3 + $0x10] sm:$0xff]  ;;  %v155_v49 = vld [vmem:[%s1699_s3 + $0x18] sm:$0xff]  ;;  %s1600_s4 = sld [smem:[#allocation3 + $0x2]]  ;;  %s729_s12 = scalar_lea.vmem [#allocation6], %s1640_s0 }
  0x1e   :  { %1010 = vmatpush3.xpose.msra.mxu0 %v420_v10  ;;  %v260_v42 = vmul.f32 %v1423_v41, %v1307_v6  ;;  %v893_v51 = vld [vmem:[%s1702_s6] ss:$0 sm:$0xff]  ;;  %s1620_s3 = sld [smem:[#allocation3 + $0x6]]  ;;  %s733_s1 = scalar_lea.vmem [#allocation6], %s1643_s21 }
  0x1f   :  { %1011 = vmatprep.subr.mxu0 %v419_v13  ;;  %s836_s0 = sshll.u32 %s1215_s20, 4  ;;  %s837_s0 = int_to_ptr.vmem [resolvable:$true] %s836_s0 }
  0x20   :  { %272 = vadd.xlane.f32.xlu1 %v260_v42  ;;  %s741_s16 = scalar_lea.vmem [#allocation6], %s1654_s25  ;;  %s1190_s21 = scalar_lea.vmem %s837_s0, 512 }
  0x21   :  { %p1191_p5 = scmp.ne.s32.totalorder %s837_s0, %s1190_s21  ;;  %p1195_p6 = scmp.lt.s32.totalorder %s837_s0, %s837_s0 }
  0x22   :  { %1012 = vmatpush3.xpose.msra.mxu0 %v419_v13  ;;  %p1196_p7 = scmp.lt.s32.totalorder %s1190_s21, %s1190_s21 }
  0x23   :  { %1013 = vmatprep.subr.mxu0 %v418_v14  ;;  %s697_s6 = scalar_lea.vmem [#allocation6], %s1600_s4  ;;  %s721_s4 = scalar_lea.vmem [#allocation6], %s1631_s17 }
  0x24   :  { %s713_s27 = scalar_lea.vmem [#allocation6], %s1620_s3  ;;  %s737_s3 = scalar_lea.vmem [#allocation6], %s1651_s24 }
  0x25   :  { %s745_s17 = scalar_lea.vmem [#allocation6], %s1661_s28  ;;  %p1197_p8 = por %p1196_p7, %p1195_p6 }
  0x26   :  { %1014 = vmatpush3.xpose.msra.mxu0 %v418_v14 }
  0x27   :  { %1015 = vmatprep.subr.mxu0 %v417_v15  ;;  %p1198_p9 = pnand %p1197_p8, %p1191_p5 }
  0x2a   :  { %1016 = vmatpush3.xpose.msra.mxu0 %v417_v15 }
  0x2b   :  { %1017 = vmatprep.subr.mxu0 %v416_v16 }
  0x2e   :  { %1018 = vmatpush3.xpose.msra.mxu0 %v416_v16 }
  0x2f   :  { %1019 = vmatprep.subr.mxu0 %v415_v17 }
  0x32   :  { %1020 = vmatpush3.xpose.msra.mxu0 %v415_v17 }
  0x33   :  { %1021 = vmatprep.subr.mxu0 %v414_v18 }
  0x36   :  { %1022 = vmatpush3.xpose.msra.mxu0 %v414_v18 }
  0x37   :  { %1023 = vmatprep.subr.mxu0 %v413_v19 }
  0x3a   :  { %1024 = vmatpush3.xpose.msra.mxu0 %v413_v19 }
  0x3b   :  { %1025 = vmatprep.subr.mxu0 %v412_v20 }
  0x3e   :  { %1026 = vmatpush3.xpose.msra.mxu0 %v412_v20 }
  0x3f   :  { %1027 = vmatprep.subr.mxu0 %v411_v21 }
  0x42   :  { %1028 = vmatpush3.xpose.msra.mxu0 %v411_v21 }
  0x43   :  { %1029 = vmatprep.subr.mxu0 %v410_v22 }
  0x46   :  { %1030 = vmatpush3.xpose.msra.mxu0 %v410_v22 }
  0x47   :  { %1031 = vmatprep.subr.mxu0 %v409_v23 }
  0x4a   :  { %1032 = vmatpush3.xpose.msra.mxu0 %v409_v23 }
  0x4b   :  { %1033 = vmatprep.subr.mxu0 %v408_v24 }
  0x4e   :  { %1034 = vmatpush3.xpose.msra.mxu0 %v408_v24 }
  0x51   :  { %1036 = vmatmul.mubr.f32.vlgmr.msra.gmra.mxu0 %v393_v25 }
  0x52   :  { %1038 = vmatprep.mubr.f32.mxu0 %v394_v26 }
  0x55   :  { %1039 = vmatmul.mubr.f32.gmra.mxu0 %v395_v27 }
  0x56   :  { %1041 = vmatprep.mubr.f32.mxu0 %v396_v28 }
  0x59   :  { %1042 = vmatmul.mubr.f32.gmra.mxu0 %v397_v29  ;;  %v262_v29 = vmul.f32 %v1423_v41, %v1287_v2 }
  0x5a   :  { %1044 = vmatprep.mubr.f32.mxu0 %v398_v30  ;;  %v261_v30 = vmul.f32 %v1423_v41, %v1297_v4 }
  0x5d   :  { %1045 = vmatmul.mubr.f32.gmra.mxu0 %v399_v31 }
  0x5e   :  { %1047 = vmatprep.mubr.f32.mxu0 %v400_v32  ;;  %v263_v32 = vmul.f32 %v1423_v41, %v1279_v0 }
  0x61   :  { %1048 = vmatmul.mubr.f32.gmra.mxu0 %v401_v33 }
  0x62   :  { %1050 = vmatprep.mubr.f32.mxu0 %v402_v34 }
  0x65   :  { %1051 = vmatmul.mubr.f32.gmra.mxu0 %v403_v35 }
  0x66   :  { %1053 = vmatprep.mubr.f32.mxu0 %v404_v36 }
  0x69   :  { %1054 = vmatmul.mubr.f32.gmra.mxu0 %v405_v38 }
  0x6a   :  { %1056 = vmatprep.mubr.f32.mxu0 %v406_v39 }
  0x6d   :  { %1057 = vmatmul.mubr.f32.gmra.mxu0 %v407_v40 }
  0xd8   :  { %v1427_v43 = vpop.f32.mrf.mxu1 }
  0xd9   :  { %v265_v35 = vmul.f32 %v1427_v43, %v1423_v41 }
  0xda   :  { %v1429_v44 = vpop.f32.mrf.mxu1 }
  0xdb   :  { %v264_v31 = vmul.f32 %v1423_v41, %v1429_v44 }
  0xdc   :  { %v1431_v45 = vpop.f32.mrf.mxu1 }
  0xdd   :  { %989 = vmatprep.subr.mxu1 %v1431_v45  ;;  %v267_v37 = vmul.f32 %v1431_v45, %v1423_v41 }
  0xde   :  { %v1434_v46 = vpop.f32.mrf.mxu1  ;;  %990 = vmatpush3.msra.mxu1 %v1431_v45 }
  0xdf   :  { %991 = vmatprep.subr.mxu1 %v1434_v46  ;;  %v266_v34 = vmul.f32 %v1423_v41, %v1434_v46 }
  0xe0   :  { %992 = vmatpush3.msra.mxu1 %v1434_v46 }
  0xe1   :  { %993 = vmatprep.subr.mxu1 %v1427_v43 }
  0xe2   :  { %994 = vmatpush3.msra.mxu1 %v1427_v43 }
  0xe3   :  { %995 = vmatprep.subr.mxu1 %v1429_v44 }
  0xe4   :  { %996 = vmatpush3.msra.mxu1 %v1429_v44 }
  0xe5   :  { %998 = vmatmul.mubr.msk.f32.vlgmr.msra.gmra.mxu1 %vm54_vm0, %v153_v47 }
  0xe6   :  { %1000 = vmatprep.mubr.msk.f32.mxu1 %vm54_vm0, %v154_v48 }
  0xe9   :  { %1001 = vmatmul.mubr.msk.f32.gmra.mxu1 %vm54_vm0, %v155_v49 }
 0x111   :  { %v1037_v50 = vpop.f32.mrf.mxu0 }
 0x112   :  { %v1458_v52 = vadd.f32 %v1037_v50, %v893_v51 }
 0x113   :  { %v497_v53 = vpop.f32.mrf.mxu0 }
 0x114   :  { %v1460_v54 = vadd.f32 %v893_v51, %v497_v53  ;;  %v1536_v53 = vpop.xlane.xlu1 %272 }
 0x115   :  { %v1040_v55 = vpop.f32.mrf.mxu0 }
 0x116   :  { %v1462_v56 = vadd.f32 %v1040_v55, %v893_v51 }
 0x117   :  { %v507_v57 = vpop.f32.mrf.mxu0 }
 0x118   :  { %v1464_v58 = vadd.f32 %v893_v51, %v507_v57 }
 0x119   :  { %v1043_v59 = vpop.f32.mrf.mxu0 }
 0x11a   :  { %v1466_v60 = vadd.f32 %v1043_v59, %v893_v51 }
 0x11b   :  { %v517_v61 = vpop.f32.mrf.mxu0 }
 0x11c   :  { %v1468_v62 = vadd.f32 %v893_v51, %v517_v61 }
 0x11d   :  { %v1046_v63 = vpop.f32.mrf.mxu0 }
 0x11e   :  { %v1470_v1 = vadd.f32 %v1046_v63, %v893_v51  ;;  %v580_v63 = vmul.f32 %v1468_v62, %v1468_v62 }
 0x11f   :  { %v527_v3 = vpop.f32.mrf.mxu0 }
 0x120   :  { %v1472_v5 = vadd.f32 %v893_v51, %v527_v3  ;;  %v583_v59 = vmul.f32 %v1470_v1, %v1470_v1 }
 0x121   :  { %v1049_v7 = vpop.f32.mrf.mxu0 }
 0x122   :  { %v1474_v8 = vadd.f32 %v1049_v7, %v893_v51  ;;  %v582_v55 = vmul.f32 %v1472_v5, %v1472_v5  ;;  %v581_v7 = vmul.f32 %v1466_v60, %v1466_v60 }
 0x123   :  { %v537_v9 = vpop.f32.mrf.mxu0 }
 0x124   :  { %v585_v10 = vmul.f32 %v1474_v8, %v1474_v8  ;;  %v1510_v33 = vadd.f32 %v893_v51, %v537_v9 }
 0x125   :  { %v1052_v11 = vpop.f32.mrf.mxu0 }
 0x126   :  { %v1478_v12 = vadd.f32 %v1052_v11, %v893_v51  ;;  %610 = vadd.xlane.f32.xlu0 %v585_v10  ;;  %v584_v36 = vmul.f32 %v1510_v33, %v1510_v33  ;;  %v578_v10 = vmul.f32 %v1464_v58, %v1464_v58 }
 0x127   :  { %v547_v13 = vpop.f32.mrf.mxu0 }
 0x128   :  { %v1480_v14 = vadd.f32 %v893_v51, %v547_v13  ;;  %v587_v15 = vmul.f32 %v1478_v12, %v1478_v12  ;;  %v579_v13 = vmul.f32 %v1462_v56, %v1462_v56 }
 0x129   :  { %v1055_v16 = vpop.f32.mrf.mxu0 }
 0x12a   :  { %v1484_v17 = vadd.f32 %v1055_v16, %v893_v51  ;;  %614 = vadd.xlane.f32.xlu0 %v587_v15  ;;  %v586_v18 = vmul.f32 %v1480_v14, %v1480_v14 }
 0x12b   :  { %v557_v19 = vpop.f32.mrf.mxu0 }
 0x12c   :  { %v1488_v20 = vadd.f32 %v893_v51, %v557_v19  ;;  %612 = vadd.xlane.f32.xlu1 %v586_v18  ;;  %v589_v21 = vmul.f32 %v1484_v17, %v1484_v17  ;;  %v576_v18 = vmul.f32 %v1460_v54, %v1460_v54 }
 0x12d   :  { %v1058_v22 = vpop.f32.mrf.mxu0 }
 0x12e   :  { %v1492_v23 = vadd.f32 %v1058_v22, %v893_v51  ;;  %v588_v27 = vmul.f32 %v1488_v20, %v1488_v20  ;;  %v577_v22 = vmul.f32 %v1458_v52, %v1458_v52 }
 0x12f   :  { %v567_v24 = vpop.f32.mrf.mxu0 }
 0x130   :  { %618 = vadd.xlane.f32.xlu1 %v589_v21  ;;  %v1494_v25 = vadd.f32 %v893_v51, %v567_v24  ;;  %v591_v26 = vmul.f32 %v1492_v23, %v1492_v23 }
 0x132   :  { %622 = vadd.xlane.f32.xlu0 %v591_v26  ;;  %v590_v28 = vmul.f32 %v1494_v25, %v1494_v25 }
 0x134   :  { %616 = vadd.xlane.f32.xlu1 %v588_v27 }
 0x136   :  { %620 = vadd.xlane.f32.xlu0 %v590_v28 }
 0x138   :  { %276 = vadd.xlane.f32.xlu1 %v262_v29 }
 0x13a   :  { %274 = vadd.xlane.f32.xlu0 %v261_v30 }
 0x13c   :  { %280 = vadd.xlane.f32.xlu1 %v264_v31 }
 0x13e   :  { %278 = vadd.xlane.f32.xlu0 %v263_v32 }
 0x140   :  { %284 = vadd.xlane.f32.xlu1 %v266_v34 }
 0x142   :  { %282 = vadd.xlane.f32.xlu0 %v265_v35 }
 0x144   :  { %608 = vadd.xlane.f32.xlu1 %v584_v36 }
 0x146   :  { %286 = vadd.xlane.f32.xlu0 %v267_v37 }
 0x1a5   :  { %v1520_v38 = vpop.f32.mrf.mxu1 }
 0x1a6   :  { %v269_v39 = vmul.f32 %v1520_v38, %v1423_v41 }
 0x1a7   :  { %v1524_v40 = vpop.f32.mrf.mxu1 }
 0x1a8   :  { %290 = vadd.xlane.f32.xlu1 %v269_v39  ;;  %v268_v42 = vmul.f32 %v1423_v41, %v1524_v40 }
 0x1a9   :  { %v1528_v47 = vpop.f32.mrf.mxu1 }
 0x1aa   :  { %288 = vadd.xlane.f32.xlu0 %v268_v42  ;;  %v271_v48 = vmul.f32 %v1528_v47, %v1423_v41 }
 0x1ab   :  { %v1532_v49 = vpop.f32.mrf.mxu1 }
 0x1ac   :  { %294 = vadd.xlane.f32.xlu1 %v271_v48  ;;  %v270_v50 = vmul.f32 %v1423_v41, %v1532_v49 }
 0x1ae   :  { %292 = vadd.xlane.f32.xlu0 %v270_v50 }
 0x1af   :  { %v611_v51 = vpop.xlane.xlu0 %610 }
 0x1b0   :  { %v633_v57 = vmax.f32 %v611_v51, 1e-24  ;;  %604 = vadd.xlane.f32.xlu1 %v582_v55 }
 0x1b2   :  { %1098 = vrsqrt.f32 %v633_v57  ;;  %606 = vadd.xlane.f32.xlu0 %v583_v59 }
 0x1b3   :  { %v615_v61 = vpop.xlane.xlu0 %614 }
 0x1b4   :  { %v635_v3 = vmax.f32 %v615_v61, 1e-24  ;;  %600 = vadd.xlane.f32.xlu1 %v580_v63 }
 0x1b5   :  { %v613_v41 = vpop.xlane.xlu1 %612 }
 0x1b6   :  { %1100 = vrsqrt.f32 %v635_v3  ;;  %v634_v9 = vmax.f32 %v613_v41, 1e-24  ;;  %602 = vadd.xlane.f32.xlu0 %v581_v7 }
 0x1b8   :  { %1102 = vrsqrt.f32 %v634_v9  ;;  %596 = vadd.xlane.f32.xlu1 %v578_v10 }
 0x1b9   :  { %v619_v11 = vpop.xlane.xlu1 %618 }
 0x1ba   :  { %v637_v15 = vmax.f32 %v619_v11, 1e-24  ;;  %598 = vadd.xlane.f32.xlu0 %v579_v13 }
 0x1bb   :  { %v623_v16 = vpop.xlane.xlu0 %622 }
 0x1bc   :  { %1104 = vrsqrt.f32 %v637_v15  ;;  %v639_v19 = vmax.f32 %v623_v16, 1e-24  ;;  %592 = vadd.xlane.f32.xlu1 %v576_v18  ;;  %v881_v15 = vmul.f32 -1.442695, %v1536_v53 }
 0x1bd   :  { %v617_v21 = vpop.xlane.xlu1 %616 }
 0x1be   :  { %1106 = vrsqrt.f32 %v639_v19  ;;  %v636_v24 = vmax.f32 %v617_v21, 1e-24  ;;  %594 = vadd.xlane.f32.xlu0 %v577_v22 }
 0x1bf   :  { %v1099_v26 = vpop.eup %1098  ;;  %v621_v27 = vpop.xlane.xlu0 %620 }
 0x1c0   :  { %1108 = vrsqrt.f32 %v636_v24  ;;  %v638_v28 = vmax.f32 %v621_v27, 1e-24  ;;  %v665_v29 = vmul.f32 %v1099_v26, %v1474_v8 }
 0x1c1   :  { %v277_v30 = vpop.xlane.xlu1 %276 }
 0x1c2   :  { %1110 = vrsqrt.f32 %v638_v28  ;;  %v883_v31 = vmul.f32 -1.442695, %v277_v30  ;;  %681 = vst [vmem:[%s1705_s9 + $0x48] sm:$0xff] %v665_v29 }
 0x1c3   :  { %v1101_v32 = vpop.eup %1100 }
 0x1c4   :  { %1112 = vpow2.f32 %v883_v31  ;;  %v667_v34 = vmul.f32 %v1101_v32, %v1478_v12 }
 0x1c5   :  { %v1103_v35 = vpop.eup %1102  ;;  %v281_v36 = vpop.xlane.xlu1 %280 }
 0x1c6   :  { %683 = vst [vmem:[%s1705_s9 + $0x58] sm:$0xff] %v667_v34  ;;  %v666_v37 = vmul.f32 %v1103_v35, %v1480_v14  ;;  %v885_v19 = vmul.f32 -1.442695, %v281_v36 }
 0x1c8   :  { %682 = vst [vmem:[%s1705_s9 + $0x50] sm:$0xff] %v666_v37 }
 0x1c9   :  { %v1105_v8 = vpop.eup %1104  ;;  %v285_v39 = vpop.xlane.xlu1 %284 }
 0x1ca   :  { %v887_v42 = vmul.f32 -1.442695, %v285_v39  ;;  %v669_v48 = vmul.f32 %v1105_v8, %v1484_v17 }
 0x1cb   :  { %v1107_v50 = vpop.eup %1106 }
 0x1cc   :  { %1114 = vpow2.f32 %v887_v42  ;;  %v671_v12 = vmul.f32 %v1107_v50, %v1492_v23  ;;  %685 = vst [vmem:[%s1705_s9 + $0x68] sm:$0xff] %v669_v48 }
 0x1cd   :  { %v1109_v51 = vpop.eup %1108  ;;  %v609_v55 = vpop.xlane.xlu1 %608 }
 0x1ce   :  { %v632_v14 = vmax.f32 %v609_v55, 1e-24  ;;  %687 = vst [vmem:[%s1705_s9 + $0x78] sm:$0xff] %v671_v12  ;;  %1059 = vmatprep.subr.mxu1 %v671_v12  ;;  %v668_v57 = vmul.f32 %v1109_v51, %v1488_v20 }
 0x1cf   :  { %v1111_v59 = vpop.eup %1110  ;;  %1060 = vmatpush3.xpose.msra.mxu1 %v671_v12 }
 0x1d0   :  { %1116 = vrsqrt.f32 %v632_v14  ;;  %v670_v17 = vmul.f32 %v1111_v59, %v1494_v25  ;;  %684 = vst [vmem:[%s1705_s9 + $0x60] sm:$0xff] %v668_v57 }
 0x1d1   :  { %v1113_v23 = vpop.eup %1112 }
 0x1d2   :  { %686 = vst [vmem:[%s1705_s9 + $0x70] sm:$0xff] %v670_v17  ;;  %1061 = vmatprep.subr.mxu1 %v670_v17  ;;  %v334_v61 = vadd.f32 1.0, %v1113_v23 }
 0x1d3   :  { %1062 = vmatpush3.xpose.msra.mxu1 %v670_v17 }
 0x1d4   :  { %1063 = vmatprep.subr.mxu1 %v669_v48  ;;  %1118 = vrcp.f32 %v334_v61 }
 0x1d7   :  { %1064 = vmatpush3.xpose.msra.mxu1 %v669_v48 }
 0x1d8   :  { %1065 = vmatprep.subr.mxu1 %v668_v57 }
 0x1d9   :  { %v1115_v20 = vpop.eup %1114 }
 0x1da   :  { %v338_v63 = vadd.f32 1.0, %v1115_v20 }
 0x1db   :  { %1066 = vmatpush3.xpose.msra.mxu1 %v668_v57 }
 0x1dc   :  { %1120 = vrcp.f32 %v338_v63  ;;  %1067 = vmatprep.subr.mxu1 %v667_v34 }
 0x1dd   :  { %v1117_v25 = vpop.eup %1116  ;;  %1122 = vpow2.f32 %v881_v15 }
 0x1de   :  { %v664_v3 = vmul.f32 %v1117_v25, %v1510_v33  ;;  %v275_v33 = vpop.xlane.xlu0 %274 }
 0x1df   :  { %1068 = vmatpush3.xpose.msra.mxu1 %v667_v34  ;;  %v882_v18 = vmul.f32 -1.442695, %v275_v33 }
 0x1e0   :  { %1069 = vmatprep.subr.mxu1 %v666_v37  ;;  %680 = vst [vmem:[%s1705_s9 + $0x40] sm:$0xff] %v664_v3 }
 0x1e1   :  { %v1119_v41 = vpop.eup %1118  ;;  %1124 = vpow2.f32 %v882_v18 }
 0x1e2   :  { %v370_v7 = vmul.f32 %v1119_v41, %v1287_v2  ;;  %v279_v13 = vpop.xlane.xlu0 %278  ;;  %1126 = vpow2.f32 %v885_v19 }
 0x1e3   :  { %1070 = vmatpush3.xpose.msra.mxu1 %v666_v37  ;;  %v884_v2 = vmul.f32 -1.442695, %v279_v13 }
 0x1e4   :  { %1071 = vmatprep.subr.mxu1 %v665_v29 }
 0x1e6   :  { %v283_v16 = vpop.xlane.xlu0 %282 }
 0x1e7   :  { %1072 = vmatpush3.xpose.msra.mxu1 %v665_v29  ;;  %v886_v21 = vmul.f32 -1.442695, %v283_v16 }
 0x1e8   :  { %1073 = vmatprep.subr.mxu1 %v664_v3 }
 0x1e9   :  { %v1121_v9 = vpop.eup %1120  ;;  %1128 = vpow2.f32 %v886_v21 }
 0x1ea   :  { %v374_v10 = vmul.f32 %v1121_v9, %v1434_v46  ;;  %v287_v22 = vpop.xlane.xlu0 %286  ;;  %1130 = vpow2.f32 %v884_v2  ;;  %v1123_v46 = vpop.eup %1122 }
 0x1eb   :  { %1074 = vmatpush3.xpose.msra.mxu1 %v664_v3  ;;  %v888_v24 = vmul.f32 -1.442695, %v287_v22  ;;  %v332_v29 = vadd.f32 1.0, %v1123_v46 }
 0x1ec   :  { %v1588_v11 = vadd.f32 %v374_v10, %v370_v7 }
 0x1ed   :  { %1132 = vpow2.f32 %v888_v24 }
 0x1ee   :  { %v1125_v27 = vpop.eup %1124 }
 0x1ef   :  { %v1127_v53 = vpop.eup %1126  ;;  %v333_v32 = vadd.f32 1.0, %v1125_v27 }
 0x1f0   :  { %v336_v37 = vadd.f32 1.0, %v1127_v53 }
 0x1f6   :  { %v1129_v35 = vpop.eup %1128 }
 0x1f7   :  { %v1131_v39 = vpop.eup %1130  ;;  %v337_v48 = vadd.f32 1.0, %v1129_v35 }
 0x1f8   :  { %v335_v55 = vadd.f32 1.0, %v1131_v39 }
 0x1fa   :  { %v1133_v12 = vpop.eup %1132 }
 0x1fb   :  { %v339_v59 = vadd.f32 1.0, %v1133_v12 }
 0x231   :  { %v291_v26 = vpop.xlane.xlu1 %290 }
 0x232   :  { %v890_v28 = vmul.f32 -1.442695, %v291_v26 }
 0x233   :  { %v289_v30 = vpop.xlane.xlu0 %288 }
 0x234   :  { %1134 = vpow2.f32 %v890_v28  ;;  %v889_v31 = vmul.f32 -1.442695, %v289_v30 }
 0x235   :  { %v295_v34 = vpop.xlane.xlu1 %294 }
 0x236   :  { %1136 = vpow2.f32 %v889_v31  ;;  %v892_v36 = vmul.f32 -1.442695, %v295_v34 }
 0x237   :  { %1138 = vrcp.f32 %v332_v29  ;;  %v293_v8 = vpop.xlane.xlu0 %292 }
 0x238   :  { %1140 = vpow2.f32 %v892_v36  ;;  %v891_v42 = vmul.f32 -1.442695, %v293_v8 }
 0x239   :  { %1142 = vrcp.f32 %v333_v32  ;;  %v605_v50 = vpop.xlane.xlu1 %604 }
 0x23a   :  { %1144 = vpow2.f32 %v891_v42  ;;  %v630_v51 = vmax.f32 %v605_v50, 1e-24 }
 0x23b   :  { %1146 = vrcp.f32 %v336_v37  ;;  %v607_v14 = vpop.xlane.xlu0 %606 }
 0x23c   :  { %1148 = vrsqrt.f32 %v630_v51  ;;  %v631_v57 = vmax.f32 %v607_v14, 1e-24 }
 0x23d   :  { %1150 = vrcp.f32 %v337_v48  ;;  %v601_v17 = vpop.xlane.xlu1 %600 }
 0x23e   :  { %1152 = vrsqrt.f32 %v631_v57  ;;  %v628_v23 = vmax.f32 %v601_v17, 1e-24 }
 0x23f   :  { %1154 = vrcp.f32 %v335_v55  ;;  %v603_v61 = vpop.xlane.xlu0 %602 }
 0x240   :  { %1156 = vrsqrt.f32 %v628_v23  ;;  %v629_v20 = vmax.f32 %v603_v61, 1e-24 }
 0x241   :  { %v1135_v63 = vpop.eup %1134  ;;  %1158 = vrcp.f32 %v339_v59  ;;  %v597_v25 = vpop.xlane.xlu1 %596 }
 0x242   :  { %v341_v3 = vadd.f32 1.0, %v1135_v63  ;;  %1160 = vrsqrt.f32 %v629_v20  ;;  %v626_v41 = vmax.f32 %v597_v25, 1e-24 }
 0x243   :  { %v1137_v7 = vpop.eup %1136  ;;  %v599_v9 = vpop.xlane.xlu0 %598 }
 0x244   :  { %v1139_v10 = vpop.eup %1138  ;;  %1162 = vrcp.f32 %v341_v3  ;;  %v340_v33 = vadd.f32 1.0, %v1137_v7  ;;  %v627_v13 = vmax.f32 %v599_v9, 1e-24 }
 0x245   :  { %v1141_v15 = vpop.eup %1140  ;;  %1164 = vrsqrt.f32 %v626_v41  ;;  %v593_v16 = vpop.xlane.xlu1 %592  ;;  %v368_v37 = vmul.f32 %v1139_v10, %v1307_v6 }
 0x246   :  { %v1143_v18 = vpop.eup %1142  ;;  %1166 = vrcp.f32 %v340_v33  ;;  %v343_v19 = vadd.f32 1.0, %v1141_v15  ;;  %v624_v21 = vmax.f32 %v593_v16, 1e-24 }
 0x247   :  { %v1145_v22 = vpop.eup %1144  ;;  %1168 = vrsqrt.f32 %v627_v13  ;;  %v595_v2 = vpop.xlane.xlu0 %594  ;;  %v369_v35 = vmul.f32 %v1143_v18, %v1297_v4 }
 0x248   :  { %v1147_v24 = vpop.eup %1146  ;;  %1170 = vrcp.f32 %v343_v19  ;;  %v342_v46 = vadd.f32 1.0, %v1145_v22  ;;  %v625_v26 = vmax.f32 %v595_v2, 1e-24 }
 0x249   :  { %v1149_v27 = vpop.eup %1148  ;;  %1172 = vrsqrt.f32 %v624_v21  ;;  %v372_v8 = vmul.f32 %v1147_v24, %v1429_v44 }
 0x24a   :  { %v1151_v28 = vpop.eup %1150  ;;  %1174 = vrcp.f32 %v342_v46  ;;  %v662_v29 = vmul.f32 %v1149_v27, %v1472_v5 }
 0x24b   :  { %v1153_v30 = vpop.eup %1152  ;;  %1176 = vrsqrt.f32 %v625_v26  ;;  %v373_v5 = vmul.f32 %v1151_v28, %v1427_v43  ;;  %v376_v12 = vadd.f32 %v372_v8, %v368_v37 }
 0x24c   :  { %v1155_v53 = vpop.eup %1154  ;;  %v663_v31 = vmul.f32 %v1153_v30, %v1470_v1  ;;  %678 = vst [vmem:[%s1705_s9 + $0x30] sm:$0xff] %v662_v29 }
 0x24d   :  { %v1157_v32 = vpop.eup %1156  ;;  %v371_v39 = vmul.f32 %v1155_v53, %v1279_v0  ;;  %v377_v42 = vadd.f32 %v373_v5, %v369_v35 }
 0x24e   :  { %v1159_v34 = vpop.eup %1158  ;;  %679 = vst [vmem:[%s1705_s9 + $0x38] sm:$0xff] %v663_v31  ;;  %1075 = vmatprep.subr.mxu1 %v663_v31  ;;  %v660_v1 = vmul.f32 %v1157_v32, %v1468_v62 }
 0x24f   :  { %v1161_v36 = vpop.eup %1160  ;;  %1076 = vmatpush3.xpose.msra.mxu1 %v663_v31  ;;  %v375_v6 = vmul.f32 %v1159_v34, %v1431_v45 }
 0x250   :  { %1077 = vmatprep.subr.mxu1 %v662_v29  ;;  %v661_v4 = vmul.f32 %v1161_v36, %v1466_v60  ;;  %676 = vst [vmem:[%s1705_s9 + $0x20] sm:$0xff] %v660_v1 }
 0x251   :  { %v1163_v43 = vpop.eup %1162  ;;  %v379_v55 = vadd.f32 %v375_v6, %v371_v39 }
 0x252   :  { %v1165_v62 = vpop.eup %1164  ;;  %v381_v44 = vmul.f32 %v1163_v43, %v1520_v38  ;;  %677 = vst [vmem:[%s1705_s9 + $0x28] sm:$0xff] %v661_v4 }
 0x253   :  { %v1167_v60 = vpop.eup %1166  ;;  %1078 = vmatpush3.xpose.msra.mxu1 %v662_v29  ;;  %v658_v48 = vmul.f32 %v1165_v62, %v1464_v58 }
 0x254   :  { %v1169_v50 = vpop.eup %1168  ;;  %v385_v0 = vadd.f32 %v381_v44, %v377_v42  ;;  %v380_v51 = vmul.f32 %v1167_v60, %v1524_v40  ;;  %1079 = vmatprep.subr.mxu1 %v661_v4 }
 0x255   :  { %v1171_v45 = vpop.eup %1170  ;;  %v659_v38 = vmul.f32 %v1169_v50, %v1462_v56  ;;  %674 = vst [vmem:[%s1705_s9 + $0x10] sm:$0xff] %v658_v48 }
 0x256   :  { %v1173_v58 = vpop.eup %1172  ;;  %389 = vst [vmem:[#allocation6 + $0x8] sm:$0xff] %v385_v0  ;;  %v384_v14 = vadd.f32 %v380_v51, %v376_v12  ;;  %v383_v57 = vmul.f32 %v1171_v45, %v1528_v47 }
 0x257   :  { %v1175_v40 = vpop.eup %1174  ;;  %1080 = vmatpush3.xpose.msra.mxu1 %v661_v4  ;;  %675 = vst [vmem:[%s1705_s9 + $0x18] sm:$0xff] %v659_v38  ;;  %v1649_v56 = vmul.f32 %v1173_v58, %v1460_v54 }
 0x258   :  { %v1177_v59 = vpop.eup %1176  ;;  %388 = vst [vmem:[#allocation6] sm:$0xff] %v384_v14  ;;  %v387_v17 = vadd.f32 %v383_v57, %v379_v55  ;;  %v382_v23 = vmul.f32 %v1175_v40, %v1532_v49  ;;  %1081 = vmatprep.subr.mxu1 %v660_v1 }
 0x259   :  { %v657_v47 = vmul.f32 %v1177_v59, %v1458_v52  ;;  %672 = vst [vmem:[%s1705_s9] sm:$0xff] %v1649_v56 }
 0x25a   :  { %391 = vst [vmem:[#allocation6 + $0x18] sm:$0xff] %v387_v17  ;;  %v386_v54 = vadd.f32 %v382_v23, %v1588_v11 }
 0x25b   :  { %1082 = vmatpush3.xpose.msra.mxu1 %v660_v1  ;;  %673 = vst [vmem:[%s1705_s9 + $0x8] sm:$0xff] %v657_v47  ;;  %s701_s9 = scalar_lea.vmem [#allocation6], %s1608_s11  ;;  %s725_s11 = scalar_lea.vmem [#allocation6], %s1634_s18 }
 0x25c   :  { %390 = vst [vmem:[#allocation6 + $0x10] sm:$0xff] %v386_v54  ;;  %1083 = vmatprep.subr.mxu1 %v659_v38  ;;  %s749_s18 = scalar_lea.vmem [#allocation6], %s1664_s5 }
 0x25f   :  { %1084 = vmatpush3.xpose.msra.mxu1 %v659_v38 }
 0x260   :  { %1085 = vmatprep.subr.mxu1 %v658_v48 }
 0x263   :  { %1086 = vmatpush3.xpose.msra.mxu1 %v658_v48  ;;  %v690_v52 = vld [vmem:[%s689_s13] sm:$0x1] }
 0x264   :  { %v694_v49 = vld [vmem:[%s693_s14] sm:$0x1]  ;;  %1087 = vmatprep.subr.mxu1 %v657_v47  ;;  %691 = vst [vmem:[#allocation2] sm:$0x1] %v690_v52 }
 0x265   :  { %v698_v11 = vld [vmem:[%s697_s6] sm:$0x1]  ;;  %695 = vst [vmem:[#allocation2 + $0x1] sm:$0x1] %v694_v49 }
 0x266   :  { %699 = vst [vmem:[#allocation2 + $0x2] sm:$0x1] %v698_v11  ;;  %v702_v61 = vld [vmem:[%s701_s9] sm:$0x1] }
 0x267   :  { %v706_v20 = vld [vmem:[%s705_s15] sm:$0x1]  ;;  %703 = vst [vmem:[#allocation2 + $0x3] sm:$0x1] %v702_v61  ;;  %1088 = vmatpush3.xpose.msra.mxu1 %v657_v47 }
 0x268   :  { %v710_v63 = vld [vmem:[%s709_s19] sm:$0x1]  ;;  %707 = vst [vmem:[#allocation2 + $0x4] sm:$0x1] %v706_v20  ;;  %1089 = vmatprep.subr.mxu1 %v1649_v56 }
 0x269   :  { %711 = vst [vmem:[#allocation2 + $0x5] sm:$0x1] %v710_v63  ;;  %v714_v25 = vld [vmem:[%s713_s27] sm:$0x1] }
 0x26a   :  { %v718_v3 = vld [vmem:[%s717_s29] sm:$0x1]  ;;  %715 = vst [vmem:[#allocation2 + $0x6] sm:$0x1] %v714_v25 }
 0x26b   :  { %v722_v41 = vld [vmem:[%s721_s4] sm:$0x1]  ;;  %719 = vst [vmem:[#allocation2 + $0x7] sm:$0x1] %v718_v3  ;;  %1090 = vmatpush3.xpose.msra.mxu1 %v1649_v56 }
 0x26c   :  { %723 = vst [vmem:[#allocation2 + $0x8] sm:$0x1] %v722_v41  ;;  %v726_v7 = vld [vmem:[%s725_s11] sm:$0x1] }
 0x26d   :  { %v730_v9 = vld [vmem:[%s729_s12] sm:$0x1]  ;;  %727 = vst [vmem:[#allocation2 + $0x9] sm:$0x1] %v726_v7 }
 0x26e   :  { %v734_v10 = vld [vmem:[%s733_s1] sm:$0x1]  ;;  %731 = vst [vmem:[#allocation2 + $0xa] sm:$0x1] %v730_v9 }
 0x26f   :  { %735 = vst [vmem:[#allocation2 + $0xb] sm:$0x1] %v734_v10  ;;  %v738_v33 = vld [vmem:[%s737_s3] sm:$0x1] }
 0x270   :  { %v742_v13 = vld [vmem:[%s741_s16] sm:$0x1]  ;;  %739 = vst [vmem:[#allocation2 + $0xc] sm:$0x1] %v738_v33 }
 0x271   :  { %v746_v15 = vld [vmem:[%s745_s17] sm:$0x1]  ;;  %743 = vst [vmem:[#allocation2 + $0xd] sm:$0x1] %v742_v13 }
 0x272   :  { %747 = vst [vmem:[#allocation2 + $0xe] sm:$0x1] %v746_v15  ;;  %v750_v16 = vld [vmem:[%s749_s18] sm:$0x1] }
 0x273   :  { %751 = vst [vmem:[#allocation2 + $0xf] sm:$0x1] %v750_v16  ;;  %v752_v18 = vld [vmem:[#allocation2] sm:$0xff] }
 0x274   :  { %1091 = vmatprep.mubr.f32.mxu1 %v752_v18 }
 0x27a   :  { %v753_v19 = vld [vmem:[#allocation2 + $0x8] sm:$0xff] }
 0x27b   :  { %1092 = vmatmul.mubr.f32.vlgmr.msra.gmra.mxu1 %v753_v19 }
 0x27c   :  { %1201 = shalt.err (!%p1198_p9)
}
 0x27d   :  { %s1216_s22 = smov 128   ;;  %s1217_s23 = smov 8  }
 0x27e   :  { %842 = dma.vmem_to_hbm [thread:$0]  %s837_s0, 512, %s1704_s8, [#allocation4], %s1216_s22, %s1216_s22, %s1217_s23  }
 0x33b   :  { %v1093_v21 = vpop.f32.mrf.mxu1 }
 0x33c   :  { %830 = vst [vmem:[%s1706_s10 + $0x8] sm:$0xff] %v1093_v21 }
 0x33d   :  { %v820_v22 = vpop.f32.mrf.mxu1 }
 0x33e   :  { %829 = vst [vmem:[%s1706_s10] sm:$0xff] %v820_v22 }
 0x33f   :  { %1212 = dma.done.wait [#allocation4], 512  }
 0x340   :  { %1213 = vsyncadd [#allocation4], 4294966784 }
 0x341   :  { %854 = vsyncpa [#allocation4], 1 }
 0x342   :  { %855 = vsyncpa [#allocation5], 1 }

</bundles_post_ra>
